<compile_context>
chip_gen: v7x
topology: tpu7x:2x2x1
jax: 0.10.0
libtpu: 0.0.40
codegen_flags: <defaults>
</compile_context>

<pallas_src>
import jax
import jax.numpy as jnp
from jax.experimental import pallas as pl
from jax.experimental.pallas import tpu as pltpu

# ---------------- model hyperparameters (small, consistent with the module) --------------
B = 2            # batch
N = 8            # sequence length
DIM = 32         # model dim
HEADS = 4
DIM_HEAD = 8
INNER = HEADS * DIM_HEAD            # 32
QKV_OUT = 3 * INNER                 # 96
RANK_QKV = min(DIM, QKV_OUT) // 4   # 8
RANK_OUT = min(INNER, DIM) // 4     # 8
EPS = 1e-5
SCALE = DIM_HEAD ** (-0.5)

BN = B * N                          # 16 -- whole problem handled in one kernel invocation
W_SLAB_COLS = QKV_OUT + DIM         # 96 + 32 = 128 (lane-dense slab width)
NEG_INF = -1e30

# slab row layout: [0:DIM) weights, [VEC_ROW:VEC_ROW+4) LN/bias vectors,
#                  [MASK_ROW:MASK_ROW+BN) block-diagonal batch mask, pad to multiple of 8
VEC_ROW = DIM                       # 32
MASK_ROW = DIM + 4                  # 36
SLAB_ROWS = ((MASK_ROW + BN + 7) // 8) * 8   # 56


# ---------------------------------- Pallas kernel ----------------------------------------
def attention_kernel(x_ref, slab_ref, o_ref):
    # Entire problem in one invocation: x is (B*N, DIM).
    x = x_ref[...].astype(jnp.float32)
    slab = slab_ref[...]                                      # (56, 128) packed params

    w_qkv = slab[0:DIM, 0:QKV_OUT]                            # (DIM, 3*INNER), SCALE folded in q cols
    gamma = slab[VEC_ROW:VEC_ROW + 1, 0:DIM]                  # (1, DIM)
    beta = slab[VEC_ROW + 1:VEC_ROW + 2, 0:DIM]               # (1, DIM)
    bias_qkv = slab[VEC_ROW + 2:VEC_ROW + 3, 0:QKV_OUT]       # (1, 3*INNER), q-part pre-scaled
    bias_out = slab[VEC_ROW + 3:VEC_ROW + 4, 0:DIM]           # (1, DIM)
    neg_mask = slab[MASK_ROW:MASK_ROW + BN, 0:BN]             # (BN, BN), 0 / -1e30 precomputed

    # ---- LayerNorm (population variance, eps=1e-5, affine) ----
    mean = jnp.mean(x, axis=-1, keepdims=True)
    var = jnp.mean((x - mean) ** 2, axis=-1, keepdims=True)
    xn = (x - mean) * jax.lax.rsqrt(var + EPS) * gamma + beta

    # ---- folded qkv projection: single matmul ----
    qkv = jnp.dot(xn, w_qkv, preferred_element_type=jnp.float32) + bias_qkv

    # ---- per-head attention with the output projection folded into the loop:
    #      y accumulates in registers; no VMEM scratch, no masked sub-128-lane stores. ----
    y = jnp.zeros((BN, DIM), jnp.float32) + bias_out
    for h in range(HEADS):
        q_sl = slice(h * DIM_HEAD, (h + 1) * DIM_HEAD)
        k_sl = slice(INNER + h * DIM_HEAD, INNER + (h + 1) * DIM_HEAD)
        v_sl = slice(2 * INNER + h * DIM_HEAD, 2 * INNER + (h + 1) * DIM_HEAD)
        qh, kh, vh = qkv[:, q_sl], qkv[:, k_sl], qkv[:, v_sl]

        # contract on the last dim of both (q @ k^T) without an explicit transpose
        dots = jax.lax.dot_general(qh, kh, (((1,), (1,)), ((), ())),
                                   preferred_element_type=jnp.float32)
        dots = dots + neg_mask                               # tokens stay within their batch
        dots = dots - jnp.max(dots, axis=-1, keepdims=True)
        e = jnp.exp(dots)
        attn = e * pl.reciprocal(jnp.sum(e, axis=-1, keepdims=True), approx=True)

        ctx = jnp.dot(attn, vh, preferred_element_type=jnp.float32)        # (BN, Dh)
        w_out_h = slab[h * DIM_HEAD:(h + 1) * DIM_HEAD, QKV_OUT:QKV_OUT + DIM]  # (Dh, DIM)
        y = y + jnp.dot(ctx, w_out_h, preferred_element_type=jnp.float32)

    o_ref[...] = y.astype(o_ref.dtype)


# ------------------------------- parameter folding / packing -----------------------------
def pack_params(p):
    """Fold low-rank factors + attention scale; pack all params + mask into ONE slab."""
    w_qkv = p["a_qkv"] @ p["b_qkv"]                       # (DIM, 3*INNER)
    w_out = p["a_out"] @ p["b_out"]                       # (INNER, DIM)
    b_qkv = p["bias_qkv"][0]                              # (3*INNER,)
    # fold the 1/sqrt(dim_head) scale into the q slice of weight and bias
    w_qkv = jnp.concatenate([w_qkv[:, :INNER] * SCALE, w_qkv[:, INNER:]], axis=1)
    b_qkv = jnp.concatenate([b_qkv[:INNER] * SCALE, b_qkv[INNER:]], axis=0)
    assert DIM == INNER, "slab packing relies on equal row counts for w_qkv / w_out"

    slab = jnp.zeros((SLAB_ROWS, W_SLAB_COLS), jnp.float32)
    slab = slab.at[0:DIM, 0:QKV_OUT].set(w_qkv)
    slab = slab.at[0:INNER, QKV_OUT:QKV_OUT + DIM].set(w_out)
    slab = slab.at[VEC_ROW, 0:DIM].set(p["gamma"][0])
    slab = slab.at[VEC_ROW + 1, 0:DIM].set(p["beta"][0])
    slab = slab.at[VEC_ROW + 2, 0:QKV_OUT].set(b_qkv)
    slab = slab.at[VEC_ROW + 3, 0:DIM].set(p["bias_out"][0])

    # precomputed block-diagonal batch mask (0 within a batch, -1e30 across batches)
    row_b = jnp.arange(BN) // N
    mask = jnp.where(row_b[:, None] == row_b[None, :], 0.0, NEG_INF).astype(jnp.float32)
    slab = slab.at[MASK_ROW:MASK_ROW + BN, 0:BN].set(mask)
    return slab


# ------------------------------------ pallas wrapper --------------------------------------
def attention_forward(x, slab):
    """x: (B, N, DIM) float32 -> (B, N, DIM) float32."""
    Bsz, n, d = x.shape
    # the precomputed mask / slab are specialized to the module constants
    assert (Bsz, n, d) == (B, N, DIM), "attention_forward packed for fixed (B, N, DIM)"
    x2d = x.reshape(Bsz * n, d)      # fuse batch: one kernel invocation, one writeback DMA

    y2d = pl.pallas_call(
        attention_kernel,
        out_shape=jax.ShapeDtypeStruct((Bsz * n, d), jnp.float32),
        in_specs=[
            pl.BlockSpec(memory_space=pltpu.MemorySpace.VMEM),   # x slab      (16, 32)
            pl.BlockSpec(memory_space=pltpu.MemorySpace.VMEM),   # param slab  (56, 128)
        ],
        out_specs=pl.BlockSpec(memory_space=pltpu.MemorySpace.VMEM),
    )(x2d, slab)
    return y2d.reshape(Bsz, n, d)


# ---------------------------- pure-JAX reference for validation --------------------------
def reference_forward(x, p):
    mean = jnp.mean(x, axis=-1, keepdims=True)
    var = jnp.mean((x - mean) ** 2, axis=-1, keepdims=True)
    xn = (x - mean) / jnp.sqrt(var + EPS) * p["gamma"][0] + p["beta"][0]
    qkv = (xn @ p["a_qkv"]) @ p["b_qkv"] + p["bias_qkv"][0]
    q, k, v = jnp.split(qkv, 3, axis=-1)

    def to_heads(t):  # (B, N, H*Dh) -> (B, H, N, Dh)
        return t.reshape(B, N, HEADS, DIM_HEAD).transpose(0, 2, 1, 3)

    q, k, v = map(to_heads, (q, k, v))
    dots = jnp.einsum("bhnd,bhmd->bhnm", q, k) * SCALE
    attn = jax.nn.softmax(dots, axis=-1)
    out = jnp.einsum("bhnm,bhmd->bhnd", attn, v)
    out = out.transpose(0, 2, 1, 3).reshape(B, N, INNER)
    return (out @ p["a_out"]) @ p["b_out"] + p["bias_out"][0]


# ------------------------------------------ main -----------------------------------------
if __name__ == "__main__":
    key = jax.random.PRNGKey(0)
    keys = jax.random.split(key, 8)

    params = {
        "gamma": jnp.ones((1, DIM), jnp.float32),
        "beta": jnp.zeros((1, DIM), jnp.float32),
        "a_qkv": 0.05 * jax.random.normal(keys[0], (DIM, RANK_QKV), jnp.float32),
        "b_qkv": 0.05 * jax.random.normal(keys[1], (RANK_QKV, QKV_OUT), jnp.float32),
        "bias_qkv": 0.01 * jax.random.normal(keys[2], (1, QKV_OUT), jnp.float32),
        "a_out": 0.05 * jax.random.normal(keys[3], (INNER, RANK_OUT), jnp.float32),
        "b_out": 0.05 * jax.random.normal(keys[4], (RANK_OUT, DIM), jnp.float32),
        "bias_out": 0.01 * jax.random.normal(keys[5], (1, DIM), jnp.float32),
    }

    x = jax.random.normal(keys[6], (B, N, DIM), jnp.float32)

    slab = pack_params(params)
    y = attention_forward(x, slab)
    y = jax.block_until_ready(y)

    y_ref = reference_forward(x, params)
    assert y.shape == (B, N, DIM)
    # slightly relaxed tolerance: approx-reciprocal softmax + folded low-rank factors
    assert jnp.allclose(y, y_ref, rtol=1e-3, atol=1e-4), "mismatch vs reference"

    print("KERNEL_OK")
</pallas_src>

<mosaic_0001>
module attributes {stable_mosaic.version = 11 : i64} {
  func.func @attention_kernel(%arg0: memref<16x32xf32, #tpu.memory_space<vmem>>, %arg1: memref<56x128xf32, #tpu.memory_space<vmem>>, %arg2: memref<16x32xf32, #tpu.memory_space<vmem>>) attributes {dimension_semantics = [], scalar_prefetch = 0 : i64, scratch_operands = 0 : i64, tpu.core_type = #tpu.core_type<tc>} {
    %c0 = arith.constant 0 : index
    %c0_0 = arith.constant 0 : index
    %0 = vector.load %arg0[%c0, %c0_0] : memref<16x32xf32, #tpu.memory_space<vmem>>, vector<16x32xf32>
    %c0_1 = arith.constant 0 : index
    %c0_2 = arith.constant 0 : index
    %1 = vector.load %arg1[%c0_1, %c0_2] : memref<56x128xf32, #tpu.memory_space<vmem>>, vector<56x128xf32>
    %2 = vector.extract_strided_slice %1 {offsets = [0, 0], sizes = [32, 96], strides = [1, 1]} : vector<56x128xf32> to vector<32x96xf32>
    %3 = vector.extract_strided_slice %1 {offsets = [32, 0], sizes = [1, 32], strides = [1, 1]} : vector<56x128xf32> to vector<1x32xf32>
    %4 = vector.extract_strided_slice %1 {offsets = [33, 0], sizes = [1, 32], strides = [1, 1]} : vector<56x128xf32> to vector<1x32xf32>
    %5 = vector.extract_strided_slice %1 {offsets = [34, 0], sizes = [1, 96], strides = [1, 1]} : vector<56x128xf32> to vector<1x96xf32>
    %6 = vector.extract_strided_slice %1 {offsets = [35, 0], sizes = [1, 32], strides = [1, 1]} : vector<56x128xf32> to vector<1x32xf32>
    %7 = vector.extract_strided_slice %1 {offsets = [36, 0], sizes = [16, 16], strides = [1, 1]} : vector<56x128xf32> to vector<16x16xf32>
    %cst = arith.constant dense<0.000000e+00> : vector<16xf32>
    %8 = vector.multi_reduction <add>, %0, %cst [1] : vector<16x32xf32> to vector<16xf32>
    %9 = vector.shape_cast %8 : vector<16xf32> to vector<16x1xf32>
    %cst_3 = arith.constant 3.200000e+01 : f32
    %10 = vector.broadcast %cst_3 : f32 to vector<16x1xf32>
    %11 = arith.divf %9, %10 : vector<16x1xf32>
    %12 = vector.broadcast %11 : vector<16x1xf32> to vector<16x32xf32>
    %13 = arith.subf %0, %12 : vector<16x32xf32>
    %14 = arith.mulf %13, %13 : vector<16x32xf32>
    %cst_4 = arith.constant dense<0.000000e+00> : vector<16xf32>
    %15 = vector.multi_reduction <add>, %14, %cst_4 [1] : vector<16x32xf32> to vector<16xf32>
    %16 = vector.shape_cast %15 : vector<16xf32> to vector<16x1xf32>
    %cst_5 = arith.constant 3.200000e+01 : f32
    %17 = vector.broadcast %cst_5 : f32 to vector<16x1xf32>
    %18 = arith.divf %16, %17 : vector<16x1xf32>
    %19 = vector.broadcast %11 : vector<16x1xf32> to vector<16x32xf32>
    %20 = arith.subf %0, %19 : vector<16x32xf32>
    %cst_6 = arith.constant 9.99999974E-6 : f32
    %21 = vector.broadcast %cst_6 : f32 to vector<16x1xf32>
    %22 = arith.addf %18, %21 : vector<16x1xf32>
    %23 = math.rsqrt %22 : vector<16x1xf32>
    %24 = vector.broadcast %23 : vector<16x1xf32> to vector<16x32xf32>
    %25 = arith.mulf %20, %24 : vector<16x32xf32>
    %26 = vector.broadcast %3 : vector<1x32xf32> to vector<16x32xf32>
    %27 = arith.mulf %25, %26 : vector<16x32xf32>
    %28 = vector.broadcast %4 : vector<1x32xf32> to vector<16x32xf32>
    %29 = arith.addf %27, %28 : vector<16x32xf32>
    %cst_7 = arith.constant dense<0.000000e+00> : vector<16x96xf32>
    %30 = tpu.matmul %29, %2, %cst_7 {dimension_numbers = #tpu.dot_dimension_numbers<[1], [0], [0], [1], [0, 0, 1, 1], [], []>} : vector<16x32xf32>, vector<32x96xf32>, vector<16x96xf32> -> vector<16x96xf32>
    %31 = vector.broadcast %5 : vector<1x96xf32> to vector<16x96xf32>
    %32 = arith.addf %30, %31 : vector<16x96xf32>
    %cst_8 = arith.constant 0.000000e+00 : f32
    %33 = vector.broadcast %cst_8 : f32 to vector<16x32xf32>
    %34 = vector.broadcast %6 : vector<1x32xf32> to vector<16x32xf32>
    %35 = arith.addf %33, %34 : vector<16x32xf32>
    %36 = vector.extract_strided_slice %32 {offsets = [0, 0], sizes = [16, 8], strides = [1, 1]} : vector<16x96xf32> to vector<16x8xf32>
    %37 = vector.extract_strided_slice %32 {offsets = [0, 32], sizes = [16, 8], strides = [1, 1]} : vector<16x96xf32> to vector<16x8xf32>
    %38 = vector.extract_strided_slice %32 {offsets = [0, 64], sizes = [16, 8], strides = [1, 1]} : vector<16x96xf32> to vector<16x8xf32>
    %cst_9 = arith.constant dense<0.000000e+00> : vector<16x16xf32>
    %39 = tpu.matmul %36, %37, %cst_9 {dimension_numbers = #tpu.dot_dimension_numbers<[1], [1], [0], [0], [0, 0, 1, 0], [], []>} : vector<16x8xf32>, vector<16x8xf32>, vector<16x16xf32> -> vector<16x16xf32>
    %40 = arith.addf %39, %7 : vector<16x16xf32>
    %cst_10 = arith.constant dense<0xFF800000> : vector<16xf32>
    %41 = vector.multi_reduction <maximumf>, %40, %cst_10 [1] : vector<16x16xf32> to vector<16xf32>
    %42 = vector.shape_cast %41 : vector<16xf32> to vector<16x1xf32>
    %43 = vector.broadcast %42 : vector<16x1xf32> to vector<16x16xf32>
    %44 = arith.subf %40, %43 : vector<16x16xf32>
    %45 = math.exp %44 : vector<16x16xf32>
    %cst_11 = arith.constant dense<0.000000e+00> : vector<16xf32>
    %46 = vector.multi_reduction <add>, %45, %cst_11 [1] : vector<16x16xf32> to vector<16xf32>
    %47 = vector.shape_cast %46 : vector<16xf32> to vector<16x1xf32>
    %48 = tpu.reciprocal %47 {approx = true} : vector<16x1xf32> -> vector<16x1xf32>
    %49 = vector.broadcast %48 : vector<16x1xf32> to vector<16x16xf32>
    %50 = arith.mulf %45, %49 : vector<16x16xf32>
    %cst_12 = arith.constant dense<0.000000e+00> : vector<16x8xf32>
    %51 = tpu.matmul %50, %38, %cst_12 {dimension_numbers = #tpu.dot_dimension_numbers<[1], [0], [0], [1], [0, 0, 1, 1], [], []>} : vector<16x16xf32>, vector<16x8xf32>, vector<16x8xf32> -> vector<16x8xf32>
    %52 = vector.extract_strided_slice %1 {offsets = [0, 96], sizes = [8, 32], strides = [1, 1]} : vector<56x128xf32> to vector<8x32xf32>
    %cst_13 = arith.constant dense<0.000000e+00> : vector<16x32xf32>
    %53 = tpu.matmul %51, %52, %cst_13 {dimension_numbers = #tpu.dot_dimension_numbers<[1], [0], [0], [1], [0, 0, 1, 1], [], []>} : vector<16x8xf32>, vector<8x32xf32>, vector<16x32xf32> -> vector<16x32xf32>
    %54 = arith.addf %35, %53 : vector<16x32xf32>
    %55 = vector.extract_strided_slice %32 {offsets = [0, 8], sizes = [16, 8], strides = [1, 1]} : vector<16x96xf32> to vector<16x8xf32>
    %56 = vector.extract_strided_slice %32 {offsets = [0, 40], sizes = [16, 8], strides = [1, 1]} : vector<16x96xf32> to vector<16x8xf32>
    %57 = vector.extract_strided_slice %32 {offsets = [0, 72], sizes = [16, 8], strides = [1, 1]} : vector<16x96xf32> to vector<16x8xf32>
    %cst_14 = arith.constant dense<0.000000e+00> : vector<16x16xf32>
    %58 = tpu.matmul %55, %56, %cst_14 {dimension_numbers = #tpu.dot_dimension_numbers<[1], [1], [0], [0], [0, 0, 1, 0], [], []>} : vector<16x8xf32>, vector<16x8xf32>, vector<16x16xf32> -> vector<16x16xf32>
    %59 = arith.addf %58, %7 : vector<16x16xf32>
    %cst_15 = arith.constant dense<0xFF800000> : vector<16xf32>
    %60 = vector.multi_reduction <maximumf>, %59, %cst_15 [1] : vector<16x16xf32> to vector<16xf32>
    %61 = vector.shape_cast %60 : vector<16xf32> to vector<16x1xf32>
    %62 = vector.broadcast %61 : vector<16x1xf32> to vector<16x16xf32>
    %63 = arith.subf %59, %62 : vector<16x16xf32>
    %64 = math.exp %63 : vector<16x16xf32>
    %cst_16 = arith.constant dense<0.000000e+00> : vector<16xf32>
    %65 = vector.multi_reduction <add>, %64, %cst_16 [1] : vector<16x16xf32> to vector<16xf32>
    %66 = vector.shape_cast %65 : vector<16xf32> to vector<16x1xf32>
    %67 = tpu.reciprocal %66 {approx = true} : vector<16x1xf32> -> vector<16x1xf32>
    %68 = vector.broadcast %67 : vector<16x1xf32> to vector<16x16xf32>
    %69 = arith.mulf %64, %68 : vector<16x16xf32>
    %cst_17 = arith.constant dense<0.000000e+00> : vector<16x8xf32>
    %70 = tpu.matmul %69, %57, %cst_17 {dimension_numbers = #tpu.dot_dimension_numbers<[1], [0], [0], [1], [0, 0, 1, 1], [], []>} : vector<16x16xf32>, vector<16x8xf32>, vector<16x8xf32> -> vector<16x8xf32>
    %71 = vector.extract_strided_slice %1 {offsets = [8, 96], sizes = [8, 32], strides = [1, 1]} : vector<56x128xf32> to vector<8x32xf32>
    %cst_18 = arith.constant dense<0.000000e+00> : vector<16x32xf32>
    %72 = tpu.matmul %70, %71, %cst_18 {dimension_numbers = #tpu.dot_dimension_numbers<[1], [0], [0], [1], [0, 0, 1, 1], [], []>} : vector<16x8xf32>, vector<8x32xf32>, vector<16x32xf32> -> vector<16x32xf32>
    %73 = arith.addf %54, %72 : vector<16x32xf32>
    %74 = vector.extract_strided_slice %32 {offsets = [0, 16], sizes = [16, 8], strides = [1, 1]} : vector<16x96xf32> to vector<16x8xf32>
    %75 = vector.extract_strided_slice %32 {offsets = [0, 48], sizes = [16, 8], strides = [1, 1]} : vector<16x96xf32> to vector<16x8xf32>
    %76 = vector.extract_strided_slice %32 {offsets = [0, 80], sizes = [16, 8], strides = [1, 1]} : vector<16x96xf32> to vector<16x8xf32>
    %cst_19 = arith.constant dense<0.000000e+00> : vector<16x16xf32>
    %77 = tpu.matmul %74, %75, %cst_19 {dimension_numbers = #tpu.dot_dimension_numbers<[1], [1], [0], [0], [0, 0, 1, 0], [], []>} : vector<16x8xf32>, vector<16x8xf32>, vector<16x16xf32> -> vector<16x16xf32>
    %78 = arith.addf %77, %7 : vector<16x16xf32>
    %cst_20 = arith.constant dense<0xFF800000> : vector<16xf32>
    %79 = vector.multi_reduction <maximumf>, %78, %cst_20 [1] : vector<16x16xf32> to vector<16xf32>
    %80 = vector.shape_cast %79 : vector<16xf32> to vector<16x1xf32>
    %81 = vector.broadcast %80 : vector<16x1xf32> to vector<16x16xf32>
    %82 = arith.subf %78, %81 : vector<16x16xf32>
    %83 = math.exp %82 : vector<16x16xf32>
    %cst_21 = arith.constant dense<0.000000e+00> : vector<16xf32>
    %84 = vector.multi_reduction <add>, %83, %cst_21 [1] : vector<16x16xf32> to vector<16xf32>
    %85 = vector.shape_cast %84 : vector<16xf32> to vector<16x1xf32>
    %86 = tpu.reciprocal %85 {approx = true} : vector<16x1xf32> -> vector<16x1xf32>
    %87 = vector.broadcast %86 : vector<16x1xf32> to vector<16x16xf32>
    %88 = arith.mulf %83, %87 : vector<16x16xf32>
    %cst_22 = arith.constant dense<0.000000e+00> : vector<16x8xf32>
    %89 = tpu.matmul %88, %76, %cst_22 {dimension_numbers = #tpu.dot_dimension_numbers<[1], [0], [0], [1], [0, 0, 1, 1], [], []>} : vector<16x16xf32>, vector<16x8xf32>, vector<16x8xf32> -> vector<16x8xf32>
    %90 = vector.extract_strided_slice %1 {offsets = [16, 96], sizes = [8, 32], strides = [1, 1]} : vector<56x128xf32> to vector<8x32xf32>
    %cst_23 = arith.constant dense<0.000000e+00> : vector<16x32xf32>
    %91 = tpu.matmul %89, %90, %cst_23 {dimension_numbers = #tpu.dot_dimension_numbers<[1], [0], [0], [1], [0, 0, 1, 1], [], []>} : vector<16x8xf32>, vector<8x32xf32>, vector<16x32xf32> -> vector<16x32xf32>
    %92 = arith.addf %73, %91 : vector<16x32xf32>
    %93 = vector.extract_strided_slice %32 {offsets = [0, 24], sizes = [16, 8], strides = [1, 1]} : vector<16x96xf32> to vector<16x8xf32>
    %94 = vector.extract_strided_slice %32 {offsets = [0, 56], sizes = [16, 8], strides = [1, 1]} : vector<16x96xf32> to vector<16x8xf32>
    %95 = vector.extract_strided_slice %32 {offsets = [0, 88], sizes = [16, 8], strides = [1, 1]} : vector<16x96xf32> to vector<16x8xf32>
    %cst_24 = arith.constant dense<0.000000e+00> : vector<16x16xf32>
    %96 = tpu.matmul %93, %94, %cst_24 {dimension_numbers = #tpu.dot_dimension_numbers<[1], [1], [0], [0], [0, 0, 1, 0], [], []>} : vector<16x8xf32>, vector<16x8xf32>, vector<16x16xf32> -> vector<16x16xf32>
    %97 = arith.addf %96, %7 : vector<16x16xf32>
    %cst_25 = arith.constant dense<0xFF800000> : vector<16xf32>
    %98 = vector.multi_reduction <maximumf>, %97, %cst_25 [1] : vector<16x16xf32> to vector<16xf32>
    %99 = vector.shape_cast %98 : vector<16xf32> to vector<16x1xf32>
    %100 = vector.broadcast %99 : vector<16x1xf32> to vector<16x16xf32>
    %101 = arith.subf %97, %100 : vector<16x16xf32>
    %102 = math.exp %101 : vector<16x16xf32>
    %cst_26 = arith.constant dense<0.000000e+00> : vector<16xf32>
    %103 = vector.multi_reduction <add>, %102, %cst_26 [1] : vector<16x16xf32> to vector<16xf32>
    %104 = vector.shape_cast %103 : vector<16xf32> to vector<16x1xf32>
    %105 = tpu.reciprocal %104 {approx = true} : vector<16x1xf32> -> vector<16x1xf32>
    %106 = vector.broadcast %105 : vector<16x1xf32> to vector<16x16xf32>
    %107 = arith.mulf %102, %106 : vector<16x16xf32>
    %cst_27 = arith.constant dense<0.000000e+00> : vector<16x8xf32>
    %108 = tpu.matmul %107, %95, %cst_27 {dimension_numbers = #tpu.dot_dimension_numbers<[1], [0], [0], [1], [0, 0, 1, 1], [], []>} : vector<16x16xf32>, vector<16x8xf32>, vector<16x8xf32> -> vector<16x8xf32>
    %109 = vector.extract_strided_slice %1 {offsets = [24, 96], sizes = [8, 32], strides = [1, 1]} : vector<56x128xf32> to vector<8x32xf32>
    %cst_28 = arith.constant dense<0.000000e+00> : vector<16x32xf32>
    %110 = tpu.matmul %108, %109, %cst_28 {dimension_numbers = #tpu.dot_dimension_numbers<[1], [0], [0], [1], [0, 0, 1, 1], [], []>} : vector<16x8xf32>, vector<8x32xf32>, vector<16x32xf32> -> vector<16x32xf32>
    %111 = arith.addf %92, %110 : vector<16x32xf32>
    %c0_29 = arith.constant 0 : index
    %c0_30 = arith.constant 0 : index
    %112 = vector.load %arg2[%c0_29, %c0_30] : memref<16x32xf32, #tpu.memory_space<vmem>>, vector<16x32xf32>
    tpu.vector_store %arg2[%c0_29, %c0_30], %111 {strides = array<i32>} : memref<16x32xf32, #tpu.memory_space<vmem>>, vector<16x32xf32>,
    return
  }
}

</mosaic_0001>

<bundles_post_ra>
// kernel: tpu_custom_call.1
= control target key start
LH: loop header
LB: loop body
LE: loop exit
PB: predicated region body
PF: predicated region fallthrough
CT: control target
= control target key end

     0   :  { %7 = vsyncpa [#allocation3], 0  ;;  %s1970_s0 = inlined_call_operand.hbm [shape: f32[16,32], index: 0, kind: input, shape index: {}]   ;;  %s1971_s1 = inlined_call_operand.hbm [shape: f32[56,128], index: 1, kind: input, shape index: {}]   ;;  %s1972_s2 = inlined_call_operand.hbm [shape: f32[16,32], index: 2, kind: output, shape index: {}]  }
   0x1   :  { %8 = vsyncpa [#allocation6], 0 }
   0x2   :  { %9 = vsyncpa [#allocation4], 0  ;;  %s1750_s9 = smov [#allocation2]   ;;  %s1678_s13 = scalar_lea.hbm %s1970_s0, 256 }
   0x3   :  { %s15_s10 = sshll.u32 %s1750_s9, 4  ;;  %p1679_p0 = scmp.ne.s32.totalorder %s1970_s0, %s1678_s13  ;;  %s16_s10 = int_to_ptr.vmem [resolvable:$true] %s15_s10 }
   0x4   :  { %p1682_p1 = scmp.lt.u32.totalorder %s1678_s13, %s1970_s0 }
   0x6   :  { %p1684_p2 = pnand %p1682_p1, %p1679_p0 }
   0x8   :  { %1687 = shalt.err (!%p1684_p2)
}
   0x9   :  { %s1688_s18 = scalar_lea.vmem %s16_s10, 256  ;;  %p1693_p4 = scmp.lt.s32.totalorder %s16_s10, %s16_s10 }
   0xa   :  { %p1689_p3 = scmp.ne.s32.totalorder %s16_s10, %s1688_s18  ;;  %p1694_p5 = scmp.lt.s32.totalorder %s1688_s18, %s1688_s18 }
   0xc   :  { %p1695_p6 = por %p1694_p5, %p1693_p4 }
   0xe   :  { %p1696_p7 = pnand %p1695_p6, %p1689_p3 }
  0x10   :  { %1699 = shalt.err (!%p1696_p7)
}
  0x11   :  { %s1751_s19 = smov 128   ;;  %s1752_s20 = smov 8  }
  0x12   :  { %21 = dma.hbm_to_vmem [thread:$0]  %s1970_s0, 256, %s16_s10, [#allocation3], %s1751_s19, %s1751_s19, %s1752_s20  }
  0x13   :  { %s1753_s23 = smov [#allocation5]   ;;  %s1700_s27 = scalar_lea.hbm %s1971_s1, 896 }
  0x14   :  { %s27_s24 = sshll.u32 %s1753_s23, 4  ;;  %p1701_p8 = scmp.ne.s32.totalorder %s1971_s1, %s1700_s27  ;;  %s28_s24 = int_to_ptr.vmem [resolvable:$true] %s27_s24 }
  0x15   :  { %p1704_p9 = scmp.lt.u32.totalorder %s1700_s27, %s1971_s1 }
  0x17   :  { %p1706_p10 = pnand %p1704_p9, %p1701_p8 }
  0x19   :  { %1709 = shalt.err (!%p1706_p10)
}
  0x1a   :  { %s1710_s4 = scalar_lea.vmem %s28_s24, 896  ;;  %p1715_p12 = scmp.lt.s32.totalorder %s28_s24, %s28_s24 }
  0x1b   :  { %p1711_p11 = scmp.ne.s32.totalorder %s28_s24, %s1710_s4  ;;  %p1716_p13 = scmp.lt.s32.totalorder %s1710_s4, %s1710_s4 }
  0x1d   :  { %p1717_p0 = por %p1716_p13, %p1715_p12 }
  0x1f   :  { %p1718_p1 = pnand %p1717_p0, %p1711_p11 }
  0x21   :  { %1721 = shalt.err (!%p1718_p1)
}
  0x22   :  { %33 = dma.hbm_to_vmem [thread:$0]  %s1971_s1, 896, %s28_s24, [#allocation6], %s1751_s19, %s1751_s19, %s1752_s20  }
  0x23   :  { %1744 = dma.done.wait [#allocation3], 256  }
  0x24   :  { %1745 = vsyncadd [#allocation3], 4294967040 }
  0x25   :  { %1746 = dma.done.wait [#allocation6], 896  }
  0x26   :  { %1747 = vsyncadd [#allocation6], 4294966400  ;;  %vm49_vm0 = vcmask 261120   ;;  %v40_v0 = vld [vmem:[#allocation2] sm:$0xff]  ;;  %v41_v1 = vld [vmem:[#allocation2 + $0x8] sm:$0xff]  ;;  %v77_v22 = vlaneseq  ;;  %vm196_vm1 = vcmask 64512  }
  0x27   :  { %v50_v2 = vsel %vm49_vm0, %v40_v0, 0.0  ;;  %v53_v3 = vsel %vm49_vm0, %v41_v1, 0.0  ;;  %v1816_v14 = vld [vmem:[#allocation5] sm:$0xff]  ;;  %v1818_v15 = vld [vmem:[#allocation5 + $0x8] sm:$0xff]  ;;  %v1820_v16 = vld [vmem:[#allocation5 + $0x10] sm:$0xff]  ;;  %s1754_s1 = smov 96  }
  0x28   :  { %51 = vadd.xlane.f32.xlu0 %v50_v2  ;;  %v1529_v17 = vpack.c.bf16 %v1818_v15, %v1816_v14  ;;  %v1824_v18 = vld [vmem:[#allocation5 + $0x18] sm:$0xff]  ;;  %v1828_v26 = vshrl.u32 %v77_v22, 7  ;;  %v1831_v29 = vld [vmem:[#allocation5 + $0x20] sm:$0xff]  ;;  %s1755_s6 = smov 88   ;;  %s1756_s7 = smov 120   ;;  %vm1858_vm2 = vmpackc.low %vm196_vm1, %vm196_vm1  ;;  %vm188_vm3 = vcmask 1043456  }
  0x29   :  { %v1533_v19 = vpack.c.bf16 %v1824_v18, %v1820_v16  ;;  %s1757_s8 = smov 112   ;;  %v47_v53 = vld [vmem:[#allocation5 + $0x28] sm:$0xff]  ;;  %v48_v54 = vld [vmem:[#allocation5 + $0x30] sm:$0xff]  ;;  %v189_v56 = vrot.slane %v1831_v29, 4  ;;  %vm280_vm4 = vcmask 130048   ;;  %s1758_s9 = smov 64  }
  0x2a   :  { %1530 = vmatprep.subr.bf16.mxu0 %v1529_v17  ;;  %v79_v28 = vsub.s32 0, %v1828_v26  ;;  %v85_v30 = vsub.s32 1, %v1828_v26  ;;  %v91_v41 = vsub.s32 2, %v1828_v26  ;;  %v190_v55 = vrot.slane %v47_v53, 4  ;;  %s1759_s10 = smov 80   ;;  %s1760_s11 = smov 56  }
  0x2b   :  { %1532 = vmatpush3.bf16.msra.mxu0 %v1529_v17  ;;  %v192_v57 = vrot.slane %v48_v54, 4  ;;  %s1761_s12 = smov 72   ;;  %s1762_s13 = smov 104  }
  0x2c   :  { %54 = vadd.xlane.f32.xlu0 %v53_v3  ;;  %1534 = vmatprep.subr.bf16.mxu0 %v1533_v19  ;;  %v80_v31 = vrot.slane %v1831_v29, %v79_v28  ;;  %v86_v34 = vrot.slane %v1831_v29, %v85_v30  ;;  %v92_v42 = vrot.slane %v1831_v29, %v91_v41  ;;  %s1763_s14 = smov 32   ;;  %s1764_s15 = smov 48  }
  0x2d   :  { %v1869_v58 = vsel %vm188_vm3, %v189_v56, %v190_v55  ;;  %v1871_v60 = vsel %vm188_vm3, %v190_v55, %v192_v57  ;;  %s1765_s16 = smov 40   ;;  %s1766_s17 = smov [#allocation7]  }
  0x2e   :  { %s1345_s18 = sshll.u32 %s1766_s17, 4  ;;  %s1346_s18 = int_to_ptr.vmem [resolvable:$true] %s1345_s18 }
  0x2f   :  { %1536 = vmatpush3.bf16.msra.mxu0 %v1533_v19  ;;  %s1722_s21 = scalar_lea.vmem %s1346_s18, 256  ;;  %p1727_p3 = scmp.lt.s32.totalorder %s1346_s18, %s1346_s18 }
  0x30   :  { %p1723_p2 = scmp.ne.s32.totalorder %s1346_s18, %s1722_s21  ;;  %p1728_p4 = scmp.lt.s32.totalorder %s1722_s21, %s1722_s21 }
  0x32   :  { %p1729_p5 = por %p1728_p4, %p1727_p3 }
  0x34   :  { %p1730_p6 = pnand %p1729_p5, %p1723_p2 }
  0xb5   :  { %v52_v4 = vpop.xlane.xlu0 %51 }
  0xb6   :  { %v57_v5 = vmul.f32 0.03125, %v52_v4 }
  0xb8   :  { %v59_v6 = vsub.f32 %v40_v0, %v57_v5 }
  0xb9   :  { %v55_v7 = vpop.xlane.xlu0 %54 }
  0xba   :  { %v58_v8 = vmul.f32 0.03125, %v55_v7  ;;  %v61_v9 = vmul.f32 %v59_v6, %v59_v6 }
  0xbc   :  { %v60_v10 = vsub.f32 %v41_v1, %v58_v8  ;;  %v63_v11 = vsel %vm49_vm0, %v61_v9, 0.0 }
  0xbd   :  { %64 = vadd.xlane.f32.xlu1 %v63_v11 }
  0xbe   :  { %v62_v12 = vmul.f32 %v60_v10, %v60_v10 }
  0xc0   :  { %v66_v13 = vsel %vm49_vm0, %v62_v12, 0.0 }
  0xc1   :  { %67 = vadd.xlane.f32.xlu1 %v66_v13 }
 0x14a   :  { %v65_v20 = vpop.xlane.xlu1 %64 }
 0x14b   :  { %v69_v21 = vmul.f32 0.03125, %v65_v20 }
 0x14d   :  { %v71_v23 = vadd.f32 1e-05, %v69_v21 }
 0x14e   :  { %v68_v24 = vpop.xlane.xlu1 %67 }
 0x14f   :  { %1642 = vrsqrt.f32 %v71_v23  ;;  %v70_v25 = vmul.f32 0.03125, %v68_v24 }
 0x151   :  { %v72_v27 = vadd.f32 1e-05, %v70_v25 }
 0x153   :  { %1644 = vrsqrt.f32 %v72_v27 }
 0x159   :  { %v1643_v32 = vpop.eup %1642 }
 0x15a   :  { %v75_v33 = vmul.f32 %v1643_v32, %v59_v6 }
 0x15c   :  { %v81_v35 = vmul.f32 %v80_v31, %v75_v33 }
 0x15d   :  { %v1645_v36 = vpop.eup %1644 }
 0x15e   :  { %v76_v37 = vmul.f32 %v1645_v36, %v60_v10  ;;  %v87_v38 = vadd.f32 %v86_v34, %v81_v35 }
 0x160   :  { %v82_v39 = vmul.f32 %v80_v31, %v76_v37  ;;  %1450 = vmatprep.mubr.msk.f32.mxu0 %vm49_vm0, %v87_v38 }
 0x162   :  { %v88_v40 = vadd.f32 %v86_v34, %v82_v39 }
 0x164   :  { %1451 = vmatmul.mubr.msk.f32.vlgmr.msra.gmra.mrb[0].mxu0 %vm49_vm0, %v88_v40 }
 0x237   :  { %v1452_v43 = vpop.f32.mrb[0].mxu0 }
 0x238   :  { %v1840_v44 = vadd.f32 %v1452_v43, %v92_v42  ;;  %v165_v45 = vpop.f32.mrb[1].mxu0 }
 0x239   :  { %v1842_v46 = vadd.f32 %v165_v45, %v92_v42 }
 0x23b   :  { %1457 = vmatprep.mubr.msk.f32.mxu1 %vm196_vm1, %v1842_v46  ;;  %v1848_v47 = vpack.i.bf16 %v1840_v44, %v1842_v46 }
 0x23d   :  { %1603 = vrot.lane.b32.xlu0 %v1848_v47, %s1754_s1 }
 0x241   :  { %1613 = vrot.lane.b32.xlu0 %v1848_v47, %s1755_s6 }
 0x245   :  { %477 = vrot.lane.b32.xlu0 %v1842_v46, %s1756_s7 }
 0x249   :  { %479 = vrot.lane.b32.xlu0 %v1840_v44, %s1756_s7 }
 0x24d   :  { %764 = vrot.lane.b32.xlu0 %v1842_v46, %s1757_s8 }
 0x2af   :  { %v1604_v48 = vpop.permute.xlu0 %1603 }
 0x2b0   :  { %v1606_v49 = vunpack.i.h.bf16 %v1604_v48  ;;  %v1605_v50 = vunpack.i.l.bf16 %v1604_v48 }
 0x2b2   :  { %v1537_v52 = vpack.c.bf16 %v1606_v49, %v1605_v50 }
 0x2b3   :  { %v1614_v17 = vpop.permute.xlu0 %1613 }
 0x2b4   :  { %1539 = vmatprep.subr.msk.bf16.mxu1 %vm1858_vm2, %v1537_v52  ;;  %v1616_v20 = vunpack.i.h.bf16 %v1614_v17  ;;  %v1615_v21 = vunpack.i.l.bf16 %v1614_v17 }
 0x2b5   :  { %1542 = vmatpush3.bf16.xpose.msk.msra.mxu1 %vm1858_vm2, %v1537_v52 }
 0x2b6   :  { %v1547_v25 = vpack.c.bf16 %v1616_v20, %v1615_v21 }
 0x2b7   :  { %v478_v33 = vpop.permute.xlu0 %477 }
 0x2bb   :  { %v480_v37 = vpop.permute.xlu0 %479 }
 0x2bc   :  { %1458 = vmatmul.mubr.msk.f32.vlgmr.msra.gmra.mrb[0].mxu1 %vm196_vm1, %v1840_v44 }
 0x2bf   :  { %v765_v38 = vpop.permute.xlu0 %764 }
 0x38f   :  { %v1459_v59 = vpop.f32.mrb[0].mxu1 }
 0x390   :  { %v271_v61 = vpop.f32.mrb[1].mxu1  ;;  %v277_v63 = vadd.f32 %v1459_v59, %v1871_v60 }
 0x391   :  { %v272_v62 = vadd.f32 %v271_v61, %v1869_v58 }
 0x392   :  { %v284_v1 = vsel %vm280_vm4, %v277_v63, -inf }
 0x393   :  { %v281_v0 = vsel %vm280_vm4, %v272_v62, -inf }
 0x394   :  { %282 = vmax.xlane.f32.xlu1 %v281_v0 }
 0x398   :  { %285 = vmax.xlane.f32.xlu1 %v284_v1 }
 0x421   :  { %v283_v2 = vpop.xlane.xlu1 %282 }
 0x422   :  { %v287_v3 = vsub.f32 %v272_v62, %v283_v2 }
 0x424   :  { %v289_v6 = vmul.f32 1.442695, %v287_v3 }
 0x425   :  { %v286_v4 = vpop.xlane.xlu1 %285 }
 0x426   :  { %v288_v5 = vsub.f32 %v277_v63, %v286_v4 }
 0x428   :  { %v291_v7 = vmul.f32 1.442695, %v288_v5 }
 0x42a   :  { %1646 = vpow2.f32 %v291_v7 }
 0x42b   :  { %1648 = vpow2.f32 %v289_v6 }
 0x434   :  { %v1647_v8 = vpop.eup %1646 }
 0x435   :  { %v296_v9 = vsel %vm280_vm4, %v1647_v8, 0.0  ;;  %v1649_v10 = vpop.eup %1648 }
 0x436   :  { %297 = vadd.xlane.f32.xlu1 %v296_v9  ;;  %v293_v11 = vsel %vm280_vm4, %v1649_v10, 0.0 }
 0x43a   :  { %294 = vadd.xlane.f32.xlu1 %v293_v11 }
 0x44b   :  { %1608 = vrot.lane.b32.xlu1 %v1848_v47, %s1758_s9 }
 0x44f   :  { %1618 = vrot.lane.b32.xlu1 %v1848_v47, %s1759_s10 }
 0x453   :  { %766 = vrot.lane.b32.xlu1 %v1840_v44, %s1757_s8 }
 0x4c3   :  { %v298_v12 = vpop.xlane.xlu1 %297 }
 0x4c4   :  { %1650 = vrcp.f32 %v298_v12 }
 0x4c7   :  { %v295_v13 = vpop.xlane.xlu1 %294 }
 0x4c8   :  { %1652 = vrcp.f32 %v295_v13 }
 0x4cb   :  { %v1609_v19 = vpop.permute.xlu1 %1608 }
 0x4cc   :  { %v1611_v22 = vunpack.i.h.bf16 %v1609_v19  ;;  %v1610_v23 = vunpack.i.l.bf16 %v1609_v19 }
 0x4ce   :  { %v1543_v24 = vpack.c.bf16 %v1611_v22, %v1610_v23  ;;  %v1651_v27 = vpop.eup %1650 }
 0x4cf   :  { %v1619_v30 = vpop.permute.xlu1 %1618  ;;  %v302_v32 = vmul.f32 %v1651_v27, %v1647_v8 }
 0x4d0   :  { %1544 = vmatprep.subr.bf16.mxu0 %v1543_v24  ;;  %v1621_v34 = vunpack.i.h.bf16 %v1619_v30  ;;  %v1620_v35 = vunpack.i.l.bf16 %v1619_v30 }
 0x4d1   :  { %1546 = vmatpush3.bf16.msra.mxu0 %v1543_v24 }
 0x4d2   :  { %v1653_v28 = vpop.eup %1652  ;;  %1549 = vmatprep.subr.msk.bf16.mxu0 %vm1858_vm2, %v1547_v25  ;;  %v1557_v36 = vpack.c.bf16 %v1621_v34, %v1620_v35 }
 0x4d3   :  { %v301_v31 = vmul.f32 %v1653_v28, %v1649_v10  ;;  %v767_v39 = vpop.permute.xlu1 %766 }
 0x4d5   :  { %1464 = vmatprep.mubr.msk.f32.mxu0 %vm280_vm4, %v301_v31 }
 0x4d6   :  { %1465 = vmatmul.mubr.msk.f32.vlgmr.msra.gmra.mrb[2].mxu0 %vm280_vm4, %v302_v32 }
 0x4d7   :  { %1476 = vmatprep.mubr.msk.f32.mxu0 %vm196_vm1, %v478_v33 }
 0x4da   :  { %1552 = vmatpush3.bf16.xpose.msk.msra.mxu0 %vm1858_vm2, %v1547_v25 }
 0x4db   :  { %1559 = vmatprep.subr.msk.bf16.mxu0 %vm1858_vm2, %v1557_v36 }
 0x4e1   :  { %1477 = vmatmul.mubr.msk.f32.vlgmr.msra.gmra.mrb[4].mxu0 %vm196_vm1, %v480_v37 }
 0x4e2   :  { %1562 = vmatpush3.bf16.xpose.msk.msra.mxu0 %vm1858_vm2, %v1557_v36  ;;  %1495 = vmatprep.mubr.msk.f32.mxu0 %vm196_vm1, %v765_v38 }
 0x4e9   :  { %1496 = vmatmul.mubr.msk.f32.vlgmr.msra.gmra.mrb[6].mxu0 %vm196_vm1, %v767_v39 }
 0x5a9   :  { %v1466_v40 = vpop.f32.mrb[2].mxu0 }
 0x5aa   :  { %v381_v41 = vpop.f32.mrb[3].mxu0 }
 0x5ab   :  { %1469 = vmatprep.mubr.msk.f32.mxu1 %vm196_vm1, %v381_v41 }
 0x5b4   :  { %v1478_v42 = vpop.f32.mrb[4].mxu0 }
 0x5b5   :  { %v565_v43 = vadd.f32 %v1478_v42, %v1871_v60  ;;  %v559_v45 = vpop.f32.mrb[5].mxu0 }
 0x5b6   :  { %v560_v48 = vadd.f32 %v559_v45, %v1869_v58 }
 0x5b7   :  { %v571_v49 = vsel %vm280_vm4, %v565_v43, -inf }
 0x5b8   :  { %572 = vmax.xlane.f32.xlu1 %v571_v49  ;;  %v568_v50 = vsel %vm280_vm4, %v560_v48, -inf }
 0x5b9   :  { %569 = vmax.xlane.f32.xlu0 %v568_v50 }
 0x5bc   :  { %v1497_v52 = vpop.f32.mrb[6].mxu0 }
 0x5bd   :  { %v846_v53 = vpop.f32.mrb[7].mxu0  ;;  %v852_v8 = vadd.f32 %v1497_v52, %v1871_v60 }
 0x5be   :  { %v847_v54 = vadd.f32 %v846_v53, %v1869_v58 }
 0x5bf   :  { %v858_v9 = vsel %vm280_vm4, %v852_v8, -inf }
 0x5c0   :  { %v855_v55 = vsel %vm280_vm4, %v847_v54, -inf }
 0x5c9   :  { %1623 = vrot.lane.b32.xlu1 %v1848_v47, %s1760_s11 }
 0x5cd   :  { %1628 = vrot.lane.b32.xlu1 %v1848_v47, %s1761_s12 }
 0x5d1   :  { %1051 = vrot.lane.b32.xlu1 %v1842_v46, %s1762_s13 }
 0x5f5   :  { %856 = vmax.xlane.f32.xlu1 %v855_v55 }
 0x606   :  { %678 = vrot.lane.b32.xlu1 %v1818_v15, %s1763_s14 }
 0x645   :  { %v573_v56 = vpop.xlane.xlu1 %572 }
 0x646   :  { %v575_v57 = vsub.f32 %v565_v43, %v573_v56  ;;  %v570_v59 = vpop.xlane.xlu0 %569 }
 0x647   :  { %v574_v61 = vsub.f32 %v560_v48, %v570_v59 }
 0x648   :  { %v578_v62 = vmul.f32 1.442695, %v575_v57 }
 0x649   :  { %v576_v63 = vmul.f32 1.442695, %v574_v61  ;;  %v1624_v0 = vpop.permute.xlu1 %1623 }
 0x64a   :  { %1654 = vpow2.f32 %v578_v62  ;;  %v1626_v11 = vunpack.i.h.bf16 %v1624_v0  ;;  %v1625_v12 = vunpack.i.l.bf16 %v1624_v0 }
 0x64b   :  { %1656 = vpow2.f32 %v576_v63 }
 0x64c   :  { %v1553_v17 = vpack.c.bf16 %v1626_v11, %v1625_v12 }
 0x64d   :  { %v1629_v1 = vpop.permute.xlu1 %1628 }
 0x64e   :  { %v1631_v46 = vunpack.i.h.bf16 %v1629_v1  ;;  %v1630_v2 = vunpack.i.l.bf16 %v1629_v1 }
 0x650   :  { %v1567_v3 = vpack.c.bf16 %v1631_v46, %v1630_v2 }
 0x651   :  { %v1052_v4 = vpop.permute.xlu1 %1051 }
 0x652   :  { %1569 = vmatprep.subr.msk.bf16.mxu0 %vm1858_vm2, %v1567_v3  ;;  %1514 = vmatprep.mubr.msk.f32.mxu0 %vm196_vm1, %v1052_v4 }
 0x653   :  { %1572 = vmatpush3.bf16.xpose.msk.msra.mxu0 %vm1858_vm2, %v1567_v3 }
 0x654   :  { %v1655_v15 = vpop.eup %1654 }
 0x655   :  { %v583_v5 = vsel %vm280_vm4, %v1655_v15, 0.0  ;;  %v1657_v6 = vpop.eup %1656 }
 0x656   :  { %584 = vadd.xlane.f32.xlu0 %v583_v5  ;;  %v580_v7 = vsel %vm280_vm4, %v1657_v6, 0.0 }
 0x65a   :  { %581 = vadd.xlane.f32.xlu0 %v580_v7 }
 0x670   :  { %391 = vrot.lane.b32.xlu0 %v1816_v14, %s1763_s14 }
 0x674   :  { %1053 = vrot.lane.b32.xlu0 %v1840_v44, %s1762_s13 }
 0x682   :  { %v857_v22 = vpop.xlane.xlu1 %856 }
 0x683   :  { %v861_v23 = vsub.f32 %v847_v54, %v857_v22 }
 0x685   :  { %v863_v27 = vmul.f32 1.442695, %v861_v23 }
 0x686   :  { %v679_v34 = vpop.permute.xlu1 %678 }
 0x693   :  { %859 = vmax.xlane.f32.xlu0 %v858_v9 }
 0x6e3   :  { %v585_v51 = vpop.xlane.xlu0 %584 }
 0x6e4   :  { %1658 = vrcp.f32 %v585_v51 }
 0x6e7   :  { %v582_v10 = vpop.xlane.xlu0 %581 }
 0x6e8   :  { %1660 = vrcp.f32 %v582_v10 }
 0x6eb   :  { %v392_v13 = vpop.permute.xlu0 %391 }
 0x6ec   :  { %1467 = vmatprep.subr.mxu1 %v392_v13 }
 0x6ed   :  { %1468 = vmatpush3.msra.mxu1 %v392_v13  ;;  %v176_v13 = vsub.s32 3, %v1828_v26 }
 0x6ee   :  { %1470 = vmatmul.mubr.msk.f32.vlgmr.msra.gmra.mrb[2].mxu1 %vm196_vm1, %v1466_v40  ;;  %1554 = vmatprep.subr.bf16.mxu1 %v1553_v17  ;;  %v1659_v44 = vpop.eup %1658 }
 0x6ef   :  { %v1054_v14 = vpop.permute.xlu0 %1053  ;;  %1556 = vmatpush3.bf16.msra.mxu1 %v1553_v17  ;;  %v589_v21 = vmul.f32 %v1659_v44, %v1655_v15  ;;  %v177_v17 = vrot.slane %v1831_v29, %v176_v13 }
 0x6f0   :  { %1515 = vmatmul.mubr.msk.f32.vlgmr.msra.gmra.mrb[8].mxu0 %vm196_vm1, %v1054_v14  ;;  %1486 = vmatprep.subr.mxu1 %v679_v34 }
 0x6f2   :  { %v1661_v19 = vpop.eup %1660 }
 0x6f3   :  { %v588_v20 = vmul.f32 %v1661_v19, %v1657_v6 }
 0x6f5   :  { %1483 = vmatprep.mubr.msk.f32.mxu1 %vm280_vm4, %v588_v20 }
 0x6f6   :  { %1484 = vmatmul.mubr.msk.f32.vlgmr.msra.gmra.mrb[4].mxu1 %vm280_vm4, %v589_v21 }
 0x6f7   :  { %1487 = vmatpush3.msra.mxu1 %v679_v34 }
 0x720   :  { %v860_v24 = vpop.xlane.xlu0 %859 }
 0x721   :  { %v862_v25 = vsub.f32 %v852_v8, %v860_v24 }
 0x723   :  { %v865_v28 = vmul.f32 1.442695, %v862_v25 }
 0x725   :  { %1662 = vpow2.f32 %v865_v28 }
 0x726   :  { %1664 = vpow2.f32 %v863_v27 }
 0x72f   :  { %v1663_v30 = vpop.eup %1662 }
 0x730   :  { %v870_v31 = vsel %vm280_vm4, %v1663_v30, 0.0  ;;  %v1665_v32 = vpop.eup %1664 }
 0x731   :  { %871 = vadd.xlane.f32.xlu0 %v870_v31  ;;  %v867_v33 = vsel %vm280_vm4, %v1665_v32, 0.0 }
 0x735   :  { %868 = vadd.xlane.f32.xlu0 %v867_v33 }
 0x74b   :  { %1633 = vrot.lane.b32.xlu0 %v1848_v47, %s1764_s15 }
 0x7be   :  { %v872_v35 = vpop.xlane.xlu0 %871 }
 0x7bf   :  { %1666 = vrcp.f32 %v872_v35 }
 0x7c2   :  { %v869_v36 = vpop.xlane.xlu0 %868 }
 0x7c3   :  { %1668 = vrcp.f32 %v869_v36  ;;  %v1516_v37 = vpop.f32.mrb[8].mxu0 }
 0x7c4   :  { %v1139_v38 = vadd.f32 %v1516_v37, %v1871_v60  ;;  %v1133_v39 = vpop.f32.mrb[9].mxu0 }
 0x7c5   :  { %v1134_v40 = vadd.f32 %v1133_v39, %v1869_v58 }
 0x7c6   :  { %v1634_v41 = vpop.permute.xlu0 %1633  ;;  %v1145_v42 = vsel %vm280_vm4, %v1139_v38, -inf }
 0x7c7   :  { %v1636_v43 = vunpack.i.h.bf16 %v1634_v41  ;;  %v1635_v45 = vunpack.i.l.bf16 %v1634_v41  ;;  %1146 = vmax.xlane.f32.xlu0 %v1145_v42  ;;  %v1142_v48 = vsel %vm280_vm4, %v1134_v40, -inf }
 0x7c8   :  { %1143 = vmax.xlane.f32.xlu1 %v1142_v48 }
 0x7c9   :  { %v1563_v49 = vpack.c.bf16 %v1636_v43, %v1635_v45  ;;  %v1485_v50 = vpop.f32.mrb[4].mxu1  ;;  %v1667_v53 = vpop.eup %1666 }
 0x7ca   :  { %v668_v52 = vpop.f32.mrb[5].mxu1  ;;  %v876_v54 = vmul.f32 %v1667_v53, %v1663_v30 }
 0x7cb   :  { %1488 = vmatprep.mubr.msk.f32.mxu1 %vm196_vm1, %v668_v52  ;;  %1564 = vmatprep.subr.bf16.mxu1 %v1563_v49 }
 0x7cc   :  { %1489 = vmatmul.mubr.msk.f32.vlgmr.msra.gmra.mrb[2].mxu1 %vm196_vm1, %v1485_v50 }
 0x7cd   :  { %v1669_v60 = vpop.eup %1668  ;;  %1566 = vmatpush3.bf16.msra.mxu1 %v1563_v49 }
 0x7ce   :  { %v875_v58 = vmul.f32 %v1669_v60, %v1665_v32 }
 0x7d0   :  { %1502 = vmatprep.mubr.msk.f32.mxu1 %vm280_vm4, %v875_v58 }
 0x7d1   :  { %1503 = vmatmul.mubr.msk.f32.vlgmr.msra.gmra.mrb[6].mxu1 %vm280_vm4, %v876_v54 }
 0x854   :  { %v1147_v55 = vpop.xlane.xlu0 %1146 }
 0x855   :  { %v1149_v56 = vsub.f32 %v1139_v38, %v1147_v55  ;;  %v1144_v57 = vpop.xlane.xlu1 %1143 }
 0x856   :  { %v1148_v59 = vsub.f32 %v1134_v40, %v1144_v57 }
 0x857   :  { %v1152_v61 = vmul.f32 1.442695, %v1149_v56 }
 0x858   :  { %v1150_v62 = vmul.f32 1.442695, %v1148_v59 }
 0x859   :  { %1670 = vpow2.f32 %v1152_v61 }
 0x85a   :  { %1672 = vpow2.f32 %v1150_v62 }
 0x863   :  { %v1671_v63 = vpop.eup %1670 }
 0x864   :  { %v1673_v0 = vpop.eup %1672  ;;  %v1157_v1 = vsel %vm280_vm4, %v1671_v63, 0.0 }
 0x865   :  { %1158 = vadd.xlane.f32.xlu0 %v1157_v1  ;;  %v1154_v46 = vsel %vm280_vm4, %v1673_v0, 0.0 }
 0x866   :  { %1155 = vadd.xlane.f32.xlu1 %v1154_v46 }
 0x877   :  { %965 = vrot.lane.b32.xlu1 %v1820_v16, %s1763_s14 }
 0x87b   :  { %1638 = vrot.lane.b32.xlu0 %v1848_v47, %s1765_s16  ;;  %1252 = vrot.lane.b32.xlu1 %v1824_v18, %s1763_s14 }
 0x8a4   :  { %v1504_v2 = vpop.f32.mrb[6].mxu1 }
 0x8a5   :  { %v955_v3 = vpop.f32.mrb[7].mxu1 }
 0x8a6   :  { %1507 = vmatprep.mubr.msk.f32.mxu1 %vm196_vm1, %v955_v3 }
 0x8f2   :  { %v1159_v4 = vpop.xlane.xlu0 %1158 }
 0x8f3   :  { %1674 = vrcp.f32 %v1159_v4  ;;  %v1156_v15 = vpop.xlane.xlu1 %1155 }
 0x8f4   :  { %1676 = vrcp.f32 %v1156_v15 }
 0x8f6   :  { %v1639_v5 = vpop.permute.xlu0 %1638 }
 0x8f7   :  { %v1641_v6 = vunpack.i.h.bf16 %v1639_v5  ;;  %v1640_v7 = vunpack.i.l.bf16 %v1639_v5  ;;  %v966_v8 = vpop.permute.xlu1 %965 }
 0x8f8   :  { %1505 = vmatprep.subr.mxu1 %v966_v8 }
 0x8f9   :  { %v1573_v16 = vpack.c.bf16 %v1641_v6, %v1640_v7  ;;  %1506 = vmatpush3.msra.mxu1 %v966_v8 }
 0x8fa   :  { %1508 = vmatmul.mubr.msk.f32.vlgmr.msra.gmra.mrb[2].mxu1 %vm196_vm1, %v1504_v2 }
 0x8fb   :  { %1574 = vmatprep.subr.bf16.mxu1 %v1573_v16  ;;  %v1253_v47 = vpop.permute.xlu1 %1252 }
 0x8fc   :  { %1576 = vmatpush3.bf16.msra.mxu1 %v1573_v16 }
 0x8fd   :  { %v1675_v18 = vpop.eup %1674  ;;  %1524 = vmatprep.subr.mxu1 %v1253_v47 }
 0x8fe   :  { %v1677_v9 = vpop.eup %1676  ;;  %v1163_v10 = vmul.f32 %v1675_v18, %v1671_v63 }
 0x8ff   :  { %v1162_v51 = vmul.f32 %v1677_v9, %v1673_v0 }
 0x901   :  { %1521 = vmatprep.mubr.msk.f32.mxu1 %vm280_vm4, %v1162_v51 }
 0x902   :  { %1522 = vmatmul.mubr.msk.f32.vlgmr.msra.gmra.mrb[8].mxu1 %vm280_vm4, %v1163_v10 }
 0x903   :  { %1525 = vmatpush3.msra.mxu1 %v1253_v47 }
 0x9d5   :  { %v1523_v11 = vpop.f32.mrb[8].mxu1 }
 0x9d6   :  { %v1242_v12 = vpop.f32.mrb[9].mxu1 }
 0x9d7   :  { %1526 = vmatprep.mubr.msk.f32.mxu1 %vm196_vm1, %v1242_v12 }
 0x9d8   :  { %1527 = vmatmul.mubr.msk.f32.vlgmr.msra.gmra.mrb[2].mxu1 %vm196_vm1, %v1523_v11 }
 0xaab   :  { %v1528_v14 = vpop.f32.mrb[2].mxu1 }
 0xaac   :  { %v1577_v44 = vadd.f32 %v1528_v14, %v177_v17  ;;  %v1327_v19 = vpop.f32.mrb[3].mxu1 }
 0xaad   :  { %v1578_v20 = vadd.f32 %v1327_v19, %v177_v17 }
 0xaae   :  { %1339 = vst.msk [vmem:[#allocation7 + $0x8] sm:$0xff] %vm49_vm0, %v1577_v44 }
 0xaaf   :  { %1338 = vst.msk [vmem:[#allocation7] sm:$0xff] %vm49_vm0, %v1578_v20 }
 0xab0   :  { %1733 = shalt.err (!%p1730_p6)
}
 0xab1   :  { %s1734_s24 = scalar_lea.hbm %s1972_s2, 256 }
 0xab2   :  { %p1735_p7 = scmp.ne.s32.totalorder %s1972_s2, %s1734_s24  ;;  %p1738_p8 = scmp.lt.u32.totalorder %s1734_s24, %s1972_s2 }
 0xab4   :  { %p1740_p9 = pnand %p1738_p8, %p1735_p7 }
 0xab6   :  { %1743 = shalt.err (!%p1740_p9)
}
 0xab7   :  { %1351 = dma.vmem_to_hbm [thread:$0]  %s1346_s18, 256, %s1972_s2, [#allocation4], %s1751_s19, %s1751_s19, %s1752_s20  }
 0xab8   :  { %1748 = dma.done.wait [#allocation4], 256  }
 0xab9   :  { %1749 = vsyncadd [#allocation4], 4294967040 }
 0xaba   :  { %1355 = vsyncpa [#allocation3], 1 }
 0xabb   :  { %1356 = vsyncpa [#allocation6], 1 }
 0xabc   :  { %1357 = vsyncpa [#allocation4], 1 }

</bundles_post_ra>
